<compile_context>
chip_gen: v5e
topology: v5e:2x2
jax: 0.10.0
libtpu: 0.0.40
codegen_flags: <defaults>
</compile_context>

<pallas_src>
import math
import functools

import jax
import jax.numpy as jnp
from jax import lax
from jax.experimental import pallas as pl
from jax.experimental.pallas import tpu as pltpu

_LANES = 128
_SUBLANES = 8
_TARGET_BLOCK_BYTES = 2 * 1024 * 1024    # ~2 MiB per input block per review
_VMEM_LIMIT_BYTES = 32 * 1024 * 1024     # safe on v5e/v6e (128 MiB) and v7x (64 MiB)


def _round_up(x, m):
    return ((x + m - 1) // m) * m


def _num_tensorcores():
    """TensorCores sharing one grid: 2 on v4/v5p/v7x megacore chips, else 1."""
    try:
        kind = jax.devices()[0].device_kind.lower()
    except Exception:
        return 1
    if ("v4" in kind) or ("v5p" in kind) or ("v7" in kind) or ("7x" in kind):
        return 2
    return 1


def _fold_to_vreg(x):
    """(R, 128) f32 -> (8, 128) partial sum via elementwise vreg adds (pure VPU)."""
    r = x.shape[0]
    return jnp.sum(x.reshape(r // _SUBLANES, _SUBLANES, _LANES), axis=0)


# ---------------------------------------------------------------------------
# Kernels
# ---------------------------------------------------------------------------
def _sum_log_kernel(x_ref, o_ref, acc_ref, *, blk_rows, n_rows, full_blocks,
                    needs_mask):
    i = pl.program_id(0)

    @pl.when(i == 0)
    def _():
        acc_ref[...] = jnp.zeros_like(acc_ref)

    x = x_ref[...].astype(jnp.float32)

    if needs_mask:
        @pl.when(i < full_blocks)          # unmasked fast path (steady state)
        def _():
            acc_ref[...] += _fold_to_vreg(jnp.log(x))

        @pl.when(i >= full_blocks)         # ragged tail block only
        def _():
            row = lax.broadcasted_iota(jnp.int32, x.shape, 0)
            valid = (i * blk_rows + row) < n_rows
            xm = jnp.where(valid, x, 1.0)  # log(1) == 0 for OOB garbage rows
            acc_ref[...] += _fold_to_vreg(jnp.log(xm))
    else:
        acc_ref[...] += _fold_to_vreg(jnp.log(x))

    @pl.when(i == pl.num_programs(0) - 1)
    def _():
        o_ref[0, 0] = jnp.sum(acc_ref[...])


def _sum_sqdiff_kernel(a_ref, b_ref, o_ref, acc_ref, *, blk_rows, n_rows,
                       full_blocks, needs_mask, bpc):
    c = pl.program_id(0)
    i = pl.program_id(1)

    @pl.when(i == 0)
    def _():
        acc_ref[...] = jnp.zeros_like(acc_ref)

    d = a_ref[...].astype(jnp.float32) - b_ref[...].astype(jnp.float32)

    if needs_mask:
        g = c * bpc + i                    # unclamped global block index

        @pl.when(g < full_blocks)          # unmasked fast path (steady state)
        def _():
            acc_ref[...] += _fold_to_vreg(d * d)

        @pl.when(g >= full_blocks)         # ragged / redundant-clamped blocks
        def _():
            row = lax.broadcasted_iota(jnp.int32, d.shape, 0)
            valid = (g * blk_rows + row) < n_rows
            dm = jnp.where(valid, d, 0.0)  # mask BEFORE squaring (NaN-safe)
            acc_ref[...] += _fold_to_vreg(dm * dm)
    else:
        acc_ref[...] += _fold_to_vreg(d * d)

    @pl.when(i == pl.num_programs(1) - 1)
    def _():
        o_ref[0, 0] = jnp.sum(acc_ref[...])


# ---------------------------------------------------------------------------
# Wrappers
# ---------------------------------------------------------------------------
def _block_rows_for(itemsize, sub, rows, override):
    cap = _TARGET_BLOCK_BYTES // (_LANES * itemsize) if override is None else override
    cap = max(sub, (cap // sub) * sub)
    return min(cap, (rows // sub) * sub)


def _sum_log_one(lk, *, block_rows=None):
    """sum(log(lk)) over one likelihood tensor (zero-copy reshape, no concat)."""
    flat = lk.reshape(-1)
    n = int(flat.shape[0])
    if n == 0:
        return jnp.float32(0.0)
    if n % _LANES != 0:
        # TODO(synk): lane-unaligned tail falls back to a small ones-pad copy.
        pad = _round_up(n, _LANES) - n
        flat = jnp.concatenate([flat, jnp.ones((pad,), flat.dtype)])  # log(1)=0

    rows = int(flat.shape[0]) // _LANES
    item = flat.dtype.itemsize
    sub = max(_SUBLANES, 32 // item)
    if rows < sub:
        # small-problem fast path: launch overhead would dominate.
        return jnp.sum(jnp.log(flat.astype(jnp.float32)))

    slab = flat.reshape(rows, _LANES)      # free bitcast reshape
    blk_rows = _block_rows_for(item, sub, rows, block_rows)
    n_blocks = -(-rows // blk_rows)
    full_blocks = rows // blk_rows
    needs_mask = n_blocks != full_blocks

    kernel = functools.partial(_sum_log_kernel, blk_rows=blk_rows, n_rows=rows,
                               full_blocks=full_blocks, needs_mask=needs_mask)
    out = pl.pallas_call(
        kernel,
        out_shape=jax.ShapeDtypeStruct((1, 1), jnp.float32),
        grid_spec=pltpu.PrefetchScalarGridSpec(
            num_scalar_prefetch=0,
            grid=(n_blocks,),
            in_specs=[pl.BlockSpec((blk_rows, _LANES), lambda i: (i, 0))],
            out_specs=pl.BlockSpec((1, 1), lambda i: (0, 0),
                                   memory_space=pltpu.MemorySpace.SMEM),
            scratch_shapes=[pltpu.VMEM((_SUBLANES, _LANES), jnp.float32)]),
        compiler_params=pltpu.CompilerParams(
            dimension_semantics=("arbitrary",),
            vmem_limit_bytes=_VMEM_LIMIT_BYTES),
        cost_estimate=pl.CostEstimate(
            flops=rows * _LANES,
            transcendentals=rows * _LANES,
            bytes_accessed=rows * _LANES * item + 4),
    )(slab)
    return out[0, 0]


def _sum_log(likelihoods):
    if isinstance(likelihoods, dict):
        likelihoods = tuple(likelihoods.values())
    likelihoods = tuple(likelihoods)
    if not likelihoods:
        return jnp.float32(0.0)
    total = jnp.float32(0.0)
    for lk in likelihoods:
        total = total + _sum_log_one(lk)
    return total


def _sum_sqdiff(a, b, *, block_rows=None):
    """sum((a - b)^2) over all elements; native-dtype inputs, f32 accumulation."""
    af = a.reshape(-1)
    bf = b.reshape(-1)
    n = int(af.shape[0])
    if n == 0:
        return jnp.float32(0.0)
    if n % _LANES != 0:
        # TODO(synk): lane-unaligned fallback zero-pads (HBM copy); rare for NCHW.
        pad = _round_up(n, _LANES) - n
        af = jnp.pad(af, (0, pad))
        bf = jnp.pad(bf, (0, pad))

    rows = int(af.shape[0]) // _LANES
    min_item = min(af.dtype.itemsize, bf.dtype.itemsize)
    sub = max(_SUBLANES, 32 // min_item)
    if rows < sub:
        # small-problem fast path.
        return jnp.sum((af.astype(jnp.float32) - bf.astype(jnp.float32)) ** 2)

    a2 = af.reshape(rows, _LANES)          # free bitcast reshape (aligned case)
    b2 = bf.reshape(rows, _LANES)

    blk_rows = _block_rows_for(min_item, sub, rows, block_rows)
    n_blocks = -(-rows // blk_rows)
    full_blocks = rows // blk_rows

    nc = _num_tensorcores() if n_blocks >= 2 else 1
    nc = min(nc, n_blocks)
    bpc = -(-n_blocks // nc)               # blocks per core slice
    needs_mask = (nc * bpc) != full_blocks
    last_block = n_blocks - 1

    def idx_map(c, i):
        return (jnp.minimum(c * bpc + i, last_block), 0)

    kernel = functools.partial(_sum_sqdiff_kernel, blk_rows=blk_rows, n_rows=rows,
                               full_blocks=full_blocks, needs_mask=needs_mask,
                               bpc=bpc)
    # TODO(synk): on v7x verify in the trace that the leading "parallel" axis
    # really shards across both TensorCores; if not, switch to pltpu.CORE_PARALLEL.
    out = pl.pallas_call(
        kernel,
        out_shape=jax.ShapeDtypeStruct((nc, 1), jnp.float32),
        grid_spec=pltpu.PrefetchScalarGridSpec(
            num_scalar_prefetch=0,
            grid=(nc, bpc),
            in_specs=[pl.BlockSpec((blk_rows, _LANES), idx_map),
                      pl.BlockSpec((blk_rows, _LANES), idx_map)],
            out_specs=pl.BlockSpec((1, 1), lambda c, i: (c, 0),
                                   memory_space=pltpu.MemorySpace.SMEM),
            scratch_shapes=[pltpu.VMEM((_SUBLANES, _LANES), jnp.float32)]),
        compiler_params=pltpu.CompilerParams(
            dimension_semantics=("parallel", "arbitrary"),
            vmem_limit_bytes=_VMEM_LIMIT_BYTES),
        cost_estimate=pl.CostEstimate(
            flops=3 * rows * _LANES,
            transcendentals=0,
            bytes_accessed=rows * _LANES * (a2.dtype.itemsize + b2.dtype.itemsize)
                           + nc * 4),
    )(a2, b2)
    return jnp.sum(out)                    # combine per-core partials


# ---------------------------------------------------------------------------
# RateDistortionLoss forward (matches the PyTorch module semantics)
# ---------------------------------------------------------------------------
@functools.partial(jax.jit, static_argnames=("lmbda",))
def rate_distortion_loss(x_hat, likelihoods, target, lmbda=0.01):
    N, _, H, W = target.shape
    num_pixels = N * H * W

    # sum_k sum(log(lk_k)) / (-ln2 * num_pixels)
    bpp_loss = _sum_log(likelihoods) / (-math.log(2) * num_pixels)

    # nn.MSELoss default reduction='mean' over ALL elements of x_hat/target.
    total_elems = 1
    for d in target.shape:
        total_elems *= d
    mse_loss = _sum_sqdiff(x_hat, target) / jnp.float32(total_elems)

    loss = lmbda * (255.0 ** 2) * mse_loss + bpp_loss
    return {"bpp_loss": bpp_loss, "mse_loss": mse_loss, "loss": loss}


# ---------------------------------------------------------------------------
# Pure-JAX reference for verification
# ---------------------------------------------------------------------------
def _ref_loss(x_hat, likelihoods, target, lmbda=0.01):
    N, _, H, W = target.shape
    num_pixels = N * H * W
    bpp = sum(jnp.sum(jnp.log(lk.astype(jnp.float32))) / (-math.log(2) * num_pixels)
              for lk in likelihoods)
    mse = jnp.mean((x_hat.astype(jnp.float32) - target.astype(jnp.float32)) ** 2)
    return {"bpp_loss": bpp, "mse_loss": mse,
            "loss": lmbda * 255.0 ** 2 * mse + bpp}


if __name__ == "__main__":
    key = jax.random.PRNGKey(0)
    k1, k2, k3, k4 = jax.random.split(key, 4)

    # Main forward pass at small, lane-aligned shapes (exercises both kernels).
    N, C, H, W = 2, 4, 16, 16
    target = jax.random.normal(k1, (N, C, H, W), dtype=jnp.float32)
    x_hat = target + 0.1 * jax.random.normal(k2, (N, C, H, W), dtype=jnp.float32)

    lk_y = jax.random.uniform(k3, (N, 8, 16, 16), dtype=jnp.float32,
                              minval=0.01, maxval=1.0)
    lk_z = jax.random.uniform(k4, (N, 8, 8, 8), dtype=jnp.float32,
                              minval=0.01, maxval=1.0)
    likelihoods = (lk_y, lk_z)

    out = rate_distortion_loss(x_hat, likelihoods, target, lmbda=0.01)
    out = jax.tree_util.tree_map(jax.block_until_ready, out)

    ref = _ref_loss(x_hat, likelihoods, target, lmbda=0.01)
    for kname in ("bpp_loss", "mse_loss", "loss"):
        err = abs(float(out[kname]) - float(ref[kname]))
        assert err < 1e-4 * (1.0 + abs(float(ref[kname]))), (
            kname, float(out[kname]), float(ref[kname]))

    # Extra coverage: multi-block grid + ragged-tail mask (forced small blocks),
    # in-kernel bf16 -> f32 upcast, and the per-core clamped-block path if the
    # device has 2 TensorCores.
    ka, kb = jax.random.split(k2)
    xa = jax.random.normal(ka, (37, 128), dtype=jnp.float32)
    xb = xa + 0.05 * jax.random.normal(kb, (37, 128), dtype=jnp.float32)
    got = jax.block_until_ready(_sum_sqdiff(xa, xb, block_rows=8))
    want = jnp.sum((xa - xb) ** 2)
    assert abs(float(got) - float(want)) < 1e-3 * (1.0 + abs(float(want)))

    xab, xbb = xa.astype(jnp.bfloat16), xb.astype(jnp.bfloat16)
    got = jax.block_until_ready(_sum_sqdiff(xab, xbb, block_rows=16))
    want = jnp.sum((xab.astype(jnp.float32) - xbb.astype(jnp.float32)) ** 2)
    assert abs(float(got) - float(want)) < 1e-3 * (1.0 + abs(float(want)))

    lk_r = jax.random.uniform(k3, (19, 128), dtype=jnp.float32,
                              minval=0.05, maxval=1.0)
    got = jax.block_until_ready(_sum_log_one(lk_r, block_rows=8))
    want = jnp.sum(jnp.log(lk_r))
    assert abs(float(got) - float(want)) < 1e-3 * (1.0 + abs(float(want)))

    print("KERNEL_OK")
</pallas_src>

<mosaic_0001>
module attributes {stable_mosaic.version = 11 : i64} {
  func.func @_sum_log_kernel(%arg0: i32, %arg1: memref<32x128xf32, #tpu.memory_space<vmem>>, %arg2: memref<1x1xf32, #tpu.memory_space<smem>>, %arg3: memref<8x128xf32, #tpu.memory_space<vmem>>) attributes {dimension_semantics = [#tpu.dimension_semantics<arbitrary>], iteration_bounds = array<i64: 1>, scalar_prefetch = 0 : i64, scratch_operands = 1 : i64, tpu.core_type = #tpu.core_type<tc>, window_params = [{transform_indices = @transform_0, window_bounds = array<i64: 32, 128>}, {transform_indices = @transform_1, window_bounds = array<i64: 1, 1>}]} {
    %c0_i32 = arith.constant 0 : i32
    %0 = arith.cmpi eq, %arg0, %c0_i32 : i32
    %1 = arith.extui %0 : i1 to i32
    %c0_i32_0 = arith.constant 0 : i32
    %2 = arith.cmpi ne, %1, %c0_i32_0 : i32
    scf.if %2 {
      %cst_8 = arith.constant 0.000000e+00 : f32
      %13 = vector.broadcast %cst_8 : f32 to vector<8x128xf32>
      %c0_9 = arith.constant 0 : index
      %c0_10 = arith.constant 0 : index
      %14 = vector.load %arg3[%c0_9, %c0_10] : memref<8x128xf32, #tpu.memory_space<vmem>>, vector<8x128xf32>
      tpu.vector_store %arg3[%c0_9, %c0_10], %13 {strides = array<i32>} : memref<8x128xf32, #tpu.memory_space<vmem>>, vector<8x128xf32>,
    } else {
    }
    %c0 = arith.constant 0 : index
    %c0_1 = arith.constant 0 : index
    %3 = vector.load %arg1[%c0, %c0_1] : memref<32x128xf32, #tpu.memory_space<vmem>>, vector<32x128xf32>
    %c0_2 = arith.constant 0 : index
    %c0_3 = arith.constant 0 : index
    %4 = vector.load %arg3[%c0_2, %c0_3] : memref<8x128xf32, #tpu.memory_space<vmem>>, vector<8x128xf32>
    %5 = math.log %3 : vector<32x128xf32>
    %6 = vector.shape_cast %5 : vector<32x128xf32> to vector<4x8x128xf32>
    %cst = arith.constant dense<0.000000e+00> : vector<8x128xf32>
    %7 = vector.multi_reduction <add>, %6, %cst [0] : vector<4x8x128xf32> to vector<8x128xf32>
    %8 = arith.addf %4, %7 : vector<8x128xf32>
    %c0_4 = arith.constant 0 : index
    %c0_5 = arith.constant 0 : index
    %9 = vector.load %arg3[%c0_4, %c0_5] : memref<8x128xf32, #tpu.memory_space<vmem>>, vector<8x128xf32>
    tpu.vector_store %arg3[%c0_4, %c0_5], %8 {strides = array<i32>} : memref<8x128xf32, #tpu.memory_space<vmem>>, vector<8x128xf32>,
    %c0_i32_6 = arith.constant 0 : i32
    %10 = arith.cmpi eq, %arg0, %c0_i32_6 : i32
    %11 = arith.extui %10 : i1 to i32
    %c0_i32_7 = arith.constant 0 : i32
    %12 = arith.cmpi ne, %11, %c0_i32_7 : i32
    scf.if %12 {
      %c0_8 = arith.constant 0 : index
      %c0_9 = arith.constant 0 : index
      %13 = vector.load %arg3[%c0_8, %c0_9] : memref<8x128xf32, #tpu.memory_space<vmem>>, vector<8x128xf32>
      %14 = vector.shape_cast %13 : vector<8x128xf32> to vector<1x8x128xf32>
      %cst_10 = arith.constant dense<0.000000e+00> : vector<1xf32>
      %15 = vector.multi_reduction <add>, %14, %cst_10 [1, 2] : vector<1x8x128xf32> to vector<1xf32>
      %16 = vector.shape_cast %15 : vector<1xf32> to vector<1x1x1xf32>
      %17 = vector.extract %16[0, 0, 0] : f32 from vector<1x1x1xf32>
      %c0_11 = arith.constant 0 : index
      %c0_12 = arith.constant 0 : index
      %18 = memref.load %arg2[%c0_11, %c0_12] : memref<1x1xf32, #tpu.memory_space<smem>>
      memref.store %17, %arg2[%c0_11, %c0_12] : memref<1x1xf32, #tpu.memory_space<smem>>
    } else {
    }
    return
  }
  func.func @transform_0(%arg0: i32) -> (i32, i32) {
    %c0_i32 = arith.constant 0 : i32
    %c0_i32_0 = arith.constant 0 : i32
    return %arg0, %c0_i32 : i32, i32
  }
  func.func @transform_1(%arg0: i32) -> (i32, i32) {
    %c0_i32 = arith.constant 0 : i32
    %c0_i32_0 = arith.constant 0 : i32
    %c0_i32_1 = arith.constant 0 : i32
    return %c0_i32, %c0_i32_0 : i32, i32
  }
}

module attributes {stable_mosaic.version = 11 : i64} {
  func.func @_sum_log_kernel(%arg0: i32, %arg1: memref<8x128xf32, #tpu.memory_space<vmem>>, %arg2: memref<1x1xf32, #tpu.memory_space<smem>>, %arg3: memref<8x128xf32, #tpu.memory_space<vmem>>) attributes {dimension_semantics = [#tpu.dimension_semantics<arbitrary>], iteration_bounds = array<i64: 1>, scalar_prefetch = 0 : i64, scratch_operands = 1 : i64, tpu.core_type = #tpu.core_type<tc>, window_params = [{transform_indices = @transform_0, window_bounds = array<i64: 8, 128>}, {transform_indices = @transform_1, window_bounds = array<i64: 1, 1>}]} {
    %c0_i32 = arith.constant 0 : i32
    %0 = arith.cmpi eq, %arg0, %c0_i32 : i32
    %1 = arith.extui %0 : i1 to i32
    %c0_i32_0 = arith.constant 0 : i32
    %2 = arith.cmpi ne, %1, %c0_i32_0 : i32
    scf.if %2 {
      %cst_8 = arith.constant 0.000000e+00 : f32
      %13 = vector.broadcast %cst_8 : f32 to vector<8x128xf32>
      %c0_9 = arith.constant 0 : index
      %c0_10 = arith.constant 0 : index
      %14 = vector.load %arg3[%c0_9, %c0_10] : memref<8x128xf32, #tpu.memory_space<vmem>>, vector<8x128xf32>
      tpu.vector_store %arg3[%c0_9, %c0_10], %13 {strides = array<i32>} : memref<8x128xf32, #tpu.memory_space<vmem>>, vector<8x128xf32>,
    } else {
    }
    %c0 = arith.constant 0 : index
    %c0_1 = arith.constant 0 : index
    %3 = vector.load %arg1[%c0, %c0_1] : memref<8x128xf32, #tpu.memory_space<vmem>>, vector<8x128xf32>
    %c0_2 = arith.constant 0 : index
    %c0_3 = arith.constant 0 : index
    %4 = vector.load %arg3[%c0_2, %c0_3] : memref<8x128xf32, #tpu.memory_space<vmem>>, vector<8x128xf32>
    %5 = math.log %3 : vector<8x128xf32>
    %6 = vector.shape_cast %5 : vector<8x128xf32> to vector<1x8x128xf32>
    %cst = arith.constant dense<0.000000e+00> : vector<8x128xf32>
    %7 = vector.multi_reduction <add>, %6, %cst [0] : vector<1x8x128xf32> to vector<8x128xf32>
    %8 = arith.addf %4, %7 : vector<8x128xf32>
    %c0_4 = arith.constant 0 : index
    %c0_5 = arith.constant 0 : index
    %9 = vector.load %arg3[%c0_4, %c0_5] : memref<8x128xf32, #tpu.memory_space<vmem>>, vector<8x128xf32>
    tpu.vector_store %arg3[%c0_4, %c0_5], %8 {strides = array<i32>} : memref<8x128xf32, #tpu.memory_space<vmem>>, vector<8x128xf32>,
    %c0_i32_6 = arith.constant 0 : i32
    %10 = arith.cmpi eq, %arg0, %c0_i32_6 : i32
    %11 = arith.extui %10 : i1 to i32
    %c0_i32_7 = arith.constant 0 : i32
    %12 = arith.cmpi ne, %11, %c0_i32_7 : i32
    scf.if %12 {
      %c0_8 = arith.constant 0 : index
      %c0_9 = arith.constant 0 : index
      %13 = vector.load %arg3[%c0_8, %c0_9] : memref<8x128xf32, #tpu.memory_space<vmem>>, vector<8x128xf32>
      %14 = vector.shape_cast %13 : vector<8x128xf32> to vector<1x8x128xf32>
      %cst_10 = arith.constant dense<0.000000e+00> : vector<1xf32>
      %15 = vector.multi_reduction <add>, %14, %cst_10 [1, 2] : vector<1x8x128xf32> to vector<1xf32>
      %16 = vector.shape_cast %15 : vector<1xf32> to vector<1x1x1xf32>
      %17 = vector.extract %16[0, 0, 0] : f32 from vector<1x1x1xf32>
      %c0_11 = arith.constant 0 : index
      %c0_12 = arith.constant 0 : index
      %18 = memref.load %arg2[%c0_11, %c0_12] : memref<1x1xf32, #tpu.memory_space<smem>>
      memref.store %17, %arg2[%c0_11, %c0_12] : memref<1x1xf32, #tpu.memory_space<smem>>
    } else {
    }
    return
  }
  func.func @transform_0(%arg0: i32) -> (i32, i32) {
    %c0_i32 = arith.constant 0 : i32
    %c0_i32_0 = arith.constant 0 : i32
    return %arg0, %c0_i32 : i32, i32
  }
  func.func @transform_1(%arg0: i32) -> (i32, i32) {
    %c0_i32 = arith.constant 0 : i32
    %c0_i32_0 = arith.constant 0 : i32
    %c0_i32_1 = arith.constant 0 : i32
    return %c0_i32, %c0_i32_0 : i32, i32
  }
}

module attributes {stable_mosaic.version = 11 : i64} {
  func.func @_sum_sqdiff_kernel(%arg0: i32, %arg1: i32, %arg2: memref<16x128xf32, #tpu.memory_space<vmem>>, %arg3: memref<16x128xf32, #tpu.memory_space<vmem>>, %arg4: memref<1x1xf32, #tpu.memory_space<smem>>, %arg5: memref<8x128xf32, #tpu.memory_space<vmem>>) attributes {dimension_semantics = [#tpu.dimension_semantics<parallel>, #tpu.dimension_semantics<arbitrary>], iteration_bounds = array<i64: 1, 1>, scalar_prefetch = 0 : i64, scratch_operands = 1 : i64, tpu.core_type = #tpu.core_type<tc>, window_params = [{transform_indices = @transform_0, window_bounds = array<i64: 16, 128>}, {transform_indices = @transform_1, window_bounds = array<i64: 16, 128>}, {transform_indices = @transform_2, window_bounds = array<i64: 1, 1>}]} {
    %c0_i32 = arith.constant 0 : i32
    %0 = arith.cmpi eq, %arg1, %c0_i32 : i32
    %1 = arith.extui %0 : i1 to i32
    %c0_i32_0 = arith.constant 0 : i32
    %2 = arith.cmpi ne, %1, %c0_i32_0 : i32
    scf.if %2 {
      %cst_10 = arith.constant 0.000000e+00 : f32
      %15 = vector.broadcast %cst_10 : f32 to vector<8x128xf32>
      %c0_11 = arith.constant 0 : index
      %c0_12 = arith.constant 0 : index
      %16 = vector.load %arg5[%c0_11, %c0_12] : memref<8x128xf32, #tpu.memory_space<vmem>>, vector<8x128xf32>
      tpu.vector_store %arg5[%c0_11, %c0_12], %15 {strides = array<i32>} : memref<8x128xf32, #tpu.memory_space<vmem>>, vector<8x128xf32>,
    } else {
    }
    %c0 = arith.constant 0 : index
    %c0_1 = arith.constant 0 : index
    %3 = vector.load %arg2[%c0, %c0_1] : memref<16x128xf32, #tpu.memory_space<vmem>>, vector<16x128xf32>
    %c0_2 = arith.constant 0 : index
    %c0_3 = arith.constant 0 : index
    %4 = vector.load %arg3[%c0_2, %c0_3] : memref<16x128xf32, #tpu.memory_space<vmem>>, vector<16x128xf32>
    %5 = arith.subf %3, %4 : vector<16x128xf32>
    %c0_4 = arith.constant 0 : index
    %c0_5 = arith.constant 0 : index
    %6 = vector.load %arg5[%c0_4, %c0_5] : memref<8x128xf32, #tpu.memory_space<vmem>>, vector<8x128xf32>
    %7 = arith.mulf %5, %5 : vector<16x128xf32>
    %8 = vector.shape_cast %7 : vector<16x128xf32> to vector<2x8x128xf32>
    %cst = arith.constant dense<0.000000e+00> : vector<8x128xf32>
    %9 = vector.multi_reduction <add>, %8, %cst [0] : vector<2x8x128xf32> to vector<8x128xf32>
    %10 = arith.addf %6, %9 : vector<8x128xf32>
    %c0_6 = arith.constant 0 : index
    %c0_7 = arith.constant 0 : index
    %11 = vector.load %arg5[%c0_6, %c0_7] : memref<8x128xf32, #tpu.memory_space<vmem>>, vector<8x128xf32>
    tpu.vector_store %arg5[%c0_6, %c0_7], %10 {strides = array<i32>} : memref<8x128xf32, #tpu.memory_space<vmem>>, vector<8x128xf32>,
    %c0_i32_8 = arith.constant 0 : i32
    %12 = arith.cmpi eq, %arg1, %c0_i32_8 : i32
    %13 = arith.extui %12 : i1 to i32
    %c0_i32_9 = arith.constant 0 : i32
    %14 = arith.cmpi ne, %13, %c0_i32_9 : i32
    scf.if %14 {
      %c0_10 = arith.constant 0 : index
      %c0_11 = arith.constant 0 : index
      %15 = vector.load %arg5[%c0_10, %c0_11] : memref<8x128xf32, #tpu.memory_space<vmem>>, vector<8x128xf32>
      %16 = vector.shape_cast %15 : vector<8x128xf32> to vector<1x8x128xf32>
      %cst_12 = arith.constant dense<0.000000e+00> : vector<1xf32>
      %17 = vector.multi_reduction <add>, %16, %cst_12 [1, 2] : vector<1x8x128xf32> to vector<1xf32>
      %18 = vector.shape_cast %17 : vector<1xf32> to vector<1x1x1xf32>
      %19 = vector.extract %18[0, 0, 0] : f32 from vector<1x1x1xf32>
      %c0_13 = arith.constant 0 : index
      %c0_14 = arith.constant 0 : index
      %20 = memref.load %arg4[%c0_13, %c0_14] : memref<1x1xf32, #tpu.memory_space<smem>>
      memref.store %19, %arg4[%c0_13, %c0_14] : memref<1x1xf32, #tpu.memory_space<smem>>
    } else {
    }
    return
  }
  func.func @transform_0(%arg0: i32, %arg1: i32) -> (i32, i32) {
    %c1_i32 = arith.constant 1 : i32
    %0 = arith.muli %arg0, %c1_i32 : i32
    %1 = arith.addi %0, %arg1 : i32
    %c0_i32 = arith.constant 0 : i32
    %2 = arith.minsi %1, %c0_i32 : i32
    %c0_i32_0 = arith.constant 0 : i32
    %c0_i32_1 = arith.constant 0 : i32
    return %2, %c0_i32_0 : i32, i32
  }
  func.func @transform_1(%arg0: i32, %arg1: i32) -> (i32, i32) {
    %c1_i32 = arith.constant 1 : i32
    %0 = arith.muli %arg0, %c1_i32 : i32
    %1 = arith.addi %0, %arg1 : i32
    %c0_i32 = arith.constant 0 : i32
    %2 = arith.minsi %1, %c0_i32 : i32
    %c0_i32_0 = arith.constant 0 : i32
    %c0_i32_1 = arith.constant 0 : i32
    return %2, %c0_i32_0 : i32, i32
  }
  func.func @transform_2(%arg0: i32, %arg1: i32) -> (i32, i32) {
    %c0_i32 = arith.constant 0 : i32
    %c0_i32_0 = arith.constant 0 : i32
    return %arg0, %c0_i32 : i32, i32
  }
}

</mosaic_0001>

<bundles_post_ra>
// kernel: rate_distortion_loss.5
= control target key start
LH: loop header
LB: loop body
LE: loop exit
PB: predicated region body
PF: predicated region fallthrough
CT: control target
= control target key end

     0   :  { %s183_s0 = inlined_call_operand.vmem [shape: f32[16,128], index: 0, kind: input, shape index: {}]   ;;  %s184_s1 = inlined_call_operand.vmem [shape: f32[16,128], index: 1, kind: input, shape index: {}]   ;;  %s185_s2 = inlined_call_operand.hbm [shape: f32[1,1], index: 2, kind: output, shape index: {}]  }
   0x1   :  { %v81_v0 = vld [vmem:[%s183_s0] sm:$0xff]  ;;  %v82_v1 = vld [vmem:[%s183_s0 + $0x8] sm:$0xff] }
   0x2   :  { %v83_v2 = vld [vmem:[%s184_s1] sm:$0xff]  ;;  %v84_v3 = vld [vmem:[%s184_s1 + $0x8] sm:$0xff] }
   0x3   :  { %v85_v4 = vsub.f32 %v81_v0, %v83_v2 }
   0x4   :  { %7 = vsyncpa [#allocation4], 0  ;;  %v86_v5 = vsub.f32 %v82_v1, %v84_v3  ;;  %s113_s18 = sshll.u32 %s185_s2, 4  ;;  %s152_s19 = smov [#allocation3]   ;;  %s114_s18 = int_to_ptr.hbm [resolvable:$true] %s113_s18 }
   0x5   :  { %v88_v6 = vmul.f32 %v85_v4, %v85_v4 }
   0x6   :  { %v89_v7 = vmul.f32 %v86_v5, %v86_v5 }
   0x8   :  { %v90_v8 = vadd.f32 %v89_v7, %v88_v6 }
   0xa   :  { %97 = vadd.xlane.f32.xlu0 %v90_v8 }
  0x7d   :  { %v98_v9 = vpop.xlane.xlu0 %97 }
  0x7e   :  { %v99_v10 = vrot.slane %v98_v9, 4 }
  0x80   :  { %v100_v11 = vadd.f32 %v99_v10, %v98_v9 }
  0x82   :  { %v101_v12 = vrot.slane %v100_v11, 2 }
  0x84   :  { %v102_v13 = vadd.f32 %v101_v12, %v100_v11 }
  0x86   :  { %v103_v14 = vrot.slane %v102_v13, 1 }
  0x88   :  { %v104_v15 = vadd.f32 %v103_v14, %v102_v13 }
  0x8a   :  { %135 = vpush %v104_v15 }
  0xbb   :  { %s136_s1 = spop %135 }
  0xbc   :  { %107 = sst [smem:[#allocation3]] %s136_s1 }
  0xbd   :  { %116 = dma.smem_to_hbm %s152_s19, 16, %s114_s18, [#allocation4]  }
  0xbe   :  { %150 = dma.done.wait [#allocation4], 16  }
  0xbf   :  { %151 = vsyncadd [#allocation4], 4294967280 }
  0xc0   :  { %121 = sfence }
  0xc1   :  { %122 = vsyncpa [#allocation4], 1 }

// kernel: rate_distortion_loss.3
= control target key start
LH: loop header
LB: loop body
LE: loop exit
PB: predicated region body
PF: predicated region fallthrough
CT: control target
= control target key end

     0   :  { %s113_s0 = inlined_call_operand.vmem [shape: f32[32,128], index: 0, kind: input, shape index: {}]   ;;  %s114_s1 = inlined_call_operand.hbm [shape: f32[1,1], index: 1, kind: output, shape index: {}]  }
   0x1   :  { %v14_v0 = vld [vmem:[%s113_s0] sm:$0xff]  ;;  %v15_v1 = vld [vmem:[%s113_s0 + $0x8] sm:$0xff]  ;;  %v16_v2 = vld [vmem:[%s113_s0 + $0x10] sm:$0xff] }
   0x2   :  { %v17_v3 = vld [vmem:[%s113_s0 + $0x18] sm:$0xff]  ;;  %65 = vlog2.f32 %v14_v0 }
   0x3   :  { %6 = vsyncpa [#allocation4], 0  ;;  %67 = vlog2.f32 %v15_v1  ;;  %s52_s15 = sshll.u32 %s114_s1, 4  ;;  %s87_s17 = smov [#allocation3]   ;;  %s53_s15 = int_to_ptr.hbm [resolvable:$true] %s52_s15 }
   0x4   :  { %69 = vlog2.f32 %v16_v2 }
   0x5   :  { %71 = vlog2.f32 %v17_v3 }
   0x8   :  { %v66_v4 = vpop.eup %65 }
   0x9   :  { %v68_v5 = vpop.eup %67  ;;  %v20_v6 = vmul.f32 0.6931472, %v66_v4 }
   0xa   :  { %v70_v7 = vpop.eup %69  ;;  %v22_v8 = vmul.f32 0.6931472, %v68_v5 }
   0xb   :  { %v72_v9 = vpop.eup %71  ;;  %v24_v10 = vmul.f32 0.6931472, %v70_v7 }
   0xc   :  { %v26_v11 = vmul.f32 0.6931472, %v72_v9  ;;  %v27_v12 = vadd.f32 %v22_v8, %v20_v6 }
   0xe   :  { %v28_v13 = vadd.f32 %v27_v12, %v24_v10 }
  0x10   :  { %v29_v14 = vadd.f32 %v28_v13, %v26_v11 }
  0x12   :  { %36 = vadd.xlane.f32.xlu0 %v29_v14 }
  0x85   :  { %v37_v15 = vpop.xlane.xlu0 %36 }
  0x86   :  { %v38_v16 = vrot.slane %v37_v15, 4 }
  0x88   :  { %v39_v17 = vadd.f32 %v38_v16, %v37_v15 }
  0x8a   :  { %v40_v18 = vrot.slane %v39_v17, 2 }
  0x8c   :  { %v41_v19 = vadd.f32 %v40_v18, %v39_v17 }
  0x8e   :  { %v42_v20 = vrot.slane %v41_v19, 1 }
  0x90   :  { %v43_v21 = vadd.f32 %v42_v20, %v41_v19 }
  0x92   :  { %62 = vpush %v43_v21 }
  0xc3   :  { %s63_s16 = spop %62 }
  0xc4   :  { %46 = sst [smem:[#allocation3]] %s63_s16 }
  0xc5   :  { %55 = dma.smem_to_hbm %s87_s17, 16, %s53_s15, [#allocation4]  }
  0xc6   :  { %85 = dma.done.wait [#allocation4], 16  }
  0xc7   :  { %86 = vsyncadd [#allocation4], 4294967280 }
  0xc8   :  { %60 = sfence }
  0xc9   :  { %61 = vsyncpa [#allocation4], 1 }

// kernel: rate_distortion_loss.4
= control target key start
LH: loop header
LB: loop body
LE: loop exit
PB: predicated region body
PF: predicated region fallthrough
CT: control target
= control target key end

     0   :  { %s87_s0 = inlined_call_operand.vmem [shape: f32[8,128], index: 0, kind: input, shape index: {}]   ;;  %s88_s1 = inlined_call_operand.hbm [shape: f32[1,1], index: 1, kind: output, shape index: {}]  }
   0x1   :  { %v14_v0 = vld [vmem:[%s87_s0] sm:$0xff] }
   0x2   :  { %6 = vsyncpa [#allocation4], 0  ;;  %54 = vlog2.f32 %v14_v0  ;;  %s41_s10 = sshll.u32 %s88_s1, 4  ;;  %s70_s0 = smov [#allocation3]   ;;  %s42_s10 = int_to_ptr.hbm [resolvable:$true] %s41_s10 }
   0x8   :  { %v55_v1 = vpop.eup %54 }
   0x9   :  { %v17_v2 = vmul.f32 0.6931472, %v55_v1 }
   0xb   :  { %25 = vadd.xlane.f32.xlu0 %v17_v2 }
  0x7e   :  { %v26_v3 = vpop.xlane.xlu0 %25 }
  0x7f   :  { %v27_v4 = vrot.slane %v26_v3, 4 }
  0x81   :  { %v28_v5 = vadd.f32 %v27_v4, %v26_v3 }
  0x83   :  { %v29_v6 = vrot.slane %v28_v5, 2 }
  0x85   :  { %v30_v7 = vadd.f32 %v29_v6, %v28_v5 }
  0x87   :  { %v31_v8 = vrot.slane %v30_v7, 1 }
  0x89   :  { %v32_v9 = vadd.f32 %v31_v8, %v30_v7 }
  0x8b   :  { %51 = vpush %v32_v9 }
  0xbc   :  { %s52_s11 = spop %51 }
  0xbd   :  { %35 = sst [smem:[#allocation3]] %s52_s11 }
  0xbe   :  { %44 = dma.smem_to_hbm %s70_s0, 16, %s42_s10, [#allocation4]  }
  0xbf   :  { %68 = dma.done.wait [#allocation4], 16  }
  0xc0   :  { %69 = vsyncadd [#allocation4], 4294967280 }
  0xc1   :  { %49 = sfence }
  0xc2   :  { %50 = vsyncpa [#allocation4], 1 }

</bundles_post_ra>
